<compile_context>
chip_gen: v5e
topology: v5e:2x2
jax: 0.10.0
libtpu: 0.0.40
codegen_flags: <defaults>
</compile_context>

<pallas_src>
import functools

import jax
import jax.numpy as jnp
from jax.experimental import pallas as pl
from jax.experimental.pallas import tpu as pltpu

SUBLANE = 8                               # f32 sublane tile
_VMEM_BUDGET_BYTES = 64 * 1024 * 1024     # v7x per-TC VMEM (smallest generation)


def _round_up(n, m):
    return ((n + m - 1) // m) * m


def _cdiv(n, m):
    return (n + m - 1) // m


def _fused_mlp_kernel(*refs, n_layers, matmul_dtype):
    """Fused (Linear -> Tanh) chain.

    refs = (x_ref, w0_ref, b0_ref, ..., w_{L-1}_ref, b_{L-1}_ref, o_ref)
    Activations stay in vregs/VMEM between layers.  Matmul operands may be
    bf16 (full-rate MXU, f32 accumulate); bias add and tanh are f32 (VPU/EUP).
    """
    x_ref = refs[0]
    o_ref = refs[-1]
    h = x_ref[...].astype(jnp.float32)
    for l in range(n_layers):
        w = refs[1 + 2 * l][...]
        b = refs[2 + 2 * l][...].astype(jnp.float32)      # (1, out) -> broadcast rows
        h = jnp.dot(h.astype(matmul_dtype), w.astype(matmul_dtype),
                    preferred_element_type=jnp.float32)
        h = jnp.tanh(h + b)                               # tanh follows every Linear
    o_ref[...] = h.astype(o_ref.dtype)


def _check_vmem(tile_rows, in_dim, out_dims, io_itemsize, param_bytes, pipelined):
    """Conservative per-tile VMEM estimate vs the v7x 64 MiB budget."""
    bufs = 2 if pipelined else 1          # BlockSpec inputs are double-buffered
    io_bytes = tile_rows * (in_dim + out_dims[-1]) * io_itemsize
    act_bytes = tile_rows * max([in_dim] + list(out_dims)) * 4   # f32 intermediates
    needed = bufs * (io_bytes + param_bytes) + 2 * act_bytes
    if needed > 0.75 * _VMEM_BUDGET_BYTES:
        raise ValueError(
            f"fused MLP tile needs ~{needed / 2**20:.1f} MiB VMEM, above the "
            f"{_VMEM_BUDGET_BYTES / 2**20:.0f} MiB (v7x) budget; reduce "
            "single_tile_rows or add output-dim blocking.")


@functools.partial(jax.jit, static_argnames=("matmul_dtype", "single_tile_rows"))
def fused_mlp_forward(x, params, *, matmul_dtype=jnp.float32,
                      single_tile_rows=1024):
    """Run the fused network.

    x:      (B, IN), unpadded true shape.
    params: list of (w (IN, OUT) [f32 or bf16], b (1, OUT) f32), unpadded.
    """
    B, in_dim = x.shape
    n_layers = len(params)
    out_dims = [w.shape[1] for w, _ in params]
    out_dim = out_dims[-1]

    kernel = functools.partial(_fused_mlp_kernel, n_layers=n_layers,
                               matmul_dtype=matmul_dtype)
    flat_params = [a for wb in params for a in wb]
    param_bytes = sum(int(a.size) * a.dtype.itemsize for a in flat_params)
    n_in = 1 + 2 * n_layers

    if B <= single_tile_rows:
        # Single tile: no grid, no pipeline bookkeeping, no pad/slice XLA ops.
        # Everything (activations + few-KiB weights) resident in VMEM.
        _check_vmem(B, in_dim, out_dims, x.dtype.itemsize, param_bytes,
                    pipelined=False)
        return pl.pallas_call(
            kernel,
            out_shape=jax.ShapeDtypeStruct((B, out_dim), x.dtype),
            in_specs=[pl.BlockSpec(memory_space=pltpu.MemorySpace.VMEM)] * n_in,
            out_specs=pl.BlockSpec(memory_space=pltpu.MemorySpace.VMEM),
        )(x, *flat_params)

    # Batch-tiled grid path for large B.  Tile = round_up(cdiv(B, n_tiles), 8)
    # (no 128-row round-up); the last partial tile is masked by Pallas.
    # Weight/bias index_map is constant so they stay resident across tiles.
    n_tiles = _cdiv(B, single_tile_rows)
    tb = _round_up(_cdiv(B, n_tiles), SUBLANE)
    grid = (_cdiv(B, tb),)
    _check_vmem(tb, in_dim, out_dims, x.dtype.itemsize, param_bytes,
                pipelined=True)

    in_specs = [pl.BlockSpec((tb, in_dim), lambda i: (i, 0))]
    for w, b in params:
        # TODO(synk): pipeline_mode=pl.Buffered(1) on these constant-index specs
        # would halve weight VMEM held; irrelevant at few-KiB weights.
        in_specs.append(pl.BlockSpec(w.shape, lambda i: (0, 0)))
        in_specs.append(pl.BlockSpec(b.shape, lambda i: (0, 0)))

    return pl.pallas_call(
        kernel,
        out_shape=jax.ShapeDtypeStruct((B, out_dim), x.dtype),
        grid=grid,
        in_specs=in_specs,
        out_specs=pl.BlockSpec((tb, out_dim), lambda i: (i, 0)),
        compiler_params=pltpu.CompilerParams(
            dimension_semantics=("parallel",)),   # v7x: shard tiles over 2 TCs
    )(x, *flat_params)


class AbstractNetPallas:
    """Mirrors AbstractNet.forward: apply each layer in self.layers in order.

    The layer chain (Linear -> Tanh repeated) runs as ONE fused Pallas kernel.
    Parameters are kept in f32 for reference semantics; the kernel copies may
    optionally store weights as bf16 for full-rate MXU on v6e/v7x.
    """

    def __init__(self, layer_dims, key, *, use_bf16_matmul=False,
                 single_tile_rows=1024):
        self.layer_dims = list(layer_dims)
        self.out_dim = layer_dims[-1]
        self.params = []          # f32 reference params (w (in,out), b (1,out))
        self.kernel_params = []   # kernel copies (bf16 weights if requested)
        self._matmul_dtype = jnp.bfloat16 if use_bf16_matmul else jnp.float32
        self._single_tile_rows = single_tile_rows
        for i in range(len(layer_dims) - 1):
            in_d, out_d = layer_dims[i], layer_dims[i + 1]
            key, kw, kb = jax.random.split(key, 3)
            # Deterministic init (PyTorch nn.Linear-style uniform bound).
            bound = 1.0 / (in_d ** 0.5)
            w_pt = jax.random.uniform(kw, (out_d, in_d), jnp.float32,
                                      minval=-bound, maxval=bound)
            b_pt = jax.random.uniform(kb, (out_d,), jnp.float32,
                                      minval=-bound, maxval=bound)
            w = w_pt.T                       # (in, out): kernel does x @ W
            b = b_pt.reshape(1, out_d)
            self.params.append((w, b))
            # Weights in matmul dtype; bias stays f32 (f32 add/tanh on v5e).
            self.kernel_params.append((w.astype(self._matmul_dtype), b))

    def forward(self, x):
        # TODO(synk): Conv2d/ConvTranspose2d subclass layers are not covered;
        # only the Linear->Tanh chains used by the metric-learning nets fuse here.
        return fused_mlp_forward(x, self.kernel_params,
                                 matmul_dtype=self._matmul_dtype,
                                 single_tile_rows=self._single_tile_rows)


def _reference_forward(net, x):
    # Pure-JAX f32 reference replicating the (Linear -> Tanh) chain.
    for w, b in net.params:
        x = jnp.tanh(x @ w + b)
    return x


if __name__ == "__main__":
    key = jax.random.PRNGKey(0)
    key, kx1, kx2, kx4, kp1, kp2, kp4 = jax.random.split(key, 7)

    # Case 1: tiny batch -> no-grid, fully VMEM-resident, no pad/slice ops.
    net1 = AbstractNetPallas([32, 32, 32], kp1)
    x1 = jax.random.normal(kx1, (8, 32), jnp.float32)
    out1 = jax.block_until_ready(net1.forward(x1))
    ref1 = _reference_forward(net1, x1)
    assert out1.shape == (8, 32)
    assert jnp.allclose(out1, ref1, atol=1e-5, rtol=1e-5), "case 1 mismatch"

    # Case 2: B=200 now stays on the single-tile path (no 256-row round-up,
    # no grid overhead), output written at its true (200, 16) shape.
    net2 = AbstractNetPallas([32, 64, 16], kp2)
    x2 = jax.random.normal(kx2, (200, 32), jnp.float32)
    out2 = jax.block_until_ready(net2.forward(x2))
    ref2 = _reference_forward(net2, x2)
    assert out2.shape == (200, 16)
    assert jnp.allclose(out2, ref2, atol=1e-5, rtol=1e-5), "case 2 mismatch"

    # Case 3: force the batch-tiled "parallel" grid path (incl. a partial last
    # tile) by lowering the single-tile threshold; same numbers expected.
    out3 = jax.block_until_ready(
        fused_mlp_forward(x2, net2.kernel_params, single_tile_rows=64))
    assert out3.shape == (200, 16)
    assert jnp.allclose(out3, ref2, atol=1e-5, rtol=1e-5), "case 3 mismatch"

    # Case 4: bf16 MXU operands (f32 accumulate, f32 bias/tanh) vs f32 reference.
    net4 = AbstractNetPallas([32, 64, 32], kp4, use_bf16_matmul=True)
    x4 = jax.random.normal(kx4, (16, 32), jnp.float32)
    out4 = jax.block_until_ready(net4.forward(x4))
    ref4 = _reference_forward(net4, x4)
    assert out4.shape == (16, 32)
    assert jnp.allclose(out4, ref4, atol=5e-2, rtol=5e-2), "case 4 mismatch"

    print("KERNEL_OK")
</pallas_src>

<mosaic_0001>
module attributes {stable_mosaic.version = 11 : i64} {
  func.func @_fused_mlp_kernel(%arg0: memref<8x32xf32, #tpu.memory_space<vmem>>, %arg1: memref<32x32xf32, #tpu.memory_space<vmem>>, %arg2: memref<1x32xf32, #tpu.memory_space<vmem>>, %arg3: memref<32x32xf32, #tpu.memory_space<vmem>>, %arg4: memref<1x32xf32, #tpu.memory_space<vmem>>, %arg5: memref<8x32xf32, #tpu.memory_space<vmem>>) attributes {dimension_semantics = [], scalar_prefetch = 0 : i64, scratch_operands = 0 : i64, tpu.core_type = #tpu.core_type<tc>} {
    %c0 = arith.constant 0 : index
    %c0_0 = arith.constant 0 : index
    %0 = vector.load %arg0[%c0, %c0_0] : memref<8x32xf32, #tpu.memory_space<vmem>>, vector<8x32xf32>
    %c0_1 = arith.constant 0 : index
    %c0_2 = arith.constant 0 : index
    %1 = vector.load %arg1[%c0_1, %c0_2] : memref<32x32xf32, #tpu.memory_space<vmem>>, vector<32x32xf32>
    %c0_3 = arith.constant 0 : index
    %c0_4 = arith.constant 0 : index
    %2 = vector.load %arg2[%c0_3, %c0_4] : memref<1x32xf32, #tpu.memory_space<vmem>>, vector<1x32xf32>
    %cst = arith.constant dense<0.000000e+00> : vector<8x32xf32>
    %3 = tpu.matmul %0, %1, %cst {dimension_numbers = #tpu.dot_dimension_numbers<[1], [0], [0], [1], [0, 0, 1, 1], [], []>} : vector<8x32xf32>, vector<32x32xf32>, vector<8x32xf32> -> vector<8x32xf32>
    %4 = vector.broadcast %2 : vector<1x32xf32> to vector<8x32xf32>
    %5 = arith.addf %3, %4 : vector<8x32xf32>
    %6 = math.tanh %5 : vector<8x32xf32>
    %c0_5 = arith.constant 0 : index
    %c0_6 = arith.constant 0 : index
    %7 = vector.load %arg3[%c0_5, %c0_6] : memref<32x32xf32, #tpu.memory_space<vmem>>, vector<32x32xf32>
    %c0_7 = arith.constant 0 : index
    %c0_8 = arith.constant 0 : index
    %8 = vector.load %arg4[%c0_7, %c0_8] : memref<1x32xf32, #tpu.memory_space<vmem>>, vector<1x32xf32>
    %cst_9 = arith.constant dense<0.000000e+00> : vector<8x32xf32>
    %9 = tpu.matmul %6, %7, %cst_9 {dimension_numbers = #tpu.dot_dimension_numbers<[1], [0], [0], [1], [0, 0, 1, 1], [], []>} : vector<8x32xf32>, vector<32x32xf32>, vector<8x32xf32> -> vector<8x32xf32>
    %10 = vector.broadcast %8 : vector<1x32xf32> to vector<8x32xf32>
    %11 = arith.addf %9, %10 : vector<8x32xf32>
    %12 = math.tanh %11 : vector<8x32xf32>
    %c0_10 = arith.constant 0 : index
    %c0_11 = arith.constant 0 : index
    %13 = vector.load %arg5[%c0_10, %c0_11] : memref<8x32xf32, #tpu.memory_space<vmem>>, vector<8x32xf32>
    tpu.vector_store %arg5[%c0_10, %c0_11], %12 {strides = array<i32>} : memref<8x32xf32, #tpu.memory_space<vmem>>, vector<8x32xf32>,
    return
  }
}

</mosaic_0001>

<bundles_post_ra>
// kernel: fused_mlp_forward.1
= control target key start
LH: loop header
LB: loop body
LE: loop exit
PB: predicated region body
PF: predicated region fallthrough
CT: control target
= control target key end

     0   :  { %10 = vsyncpa [#allocation3], 0  ;;  %s324_s0 = inlined_call_operand.hbm [shape: f32[8,32], index: 0, kind: input, shape index: {}]   ;;  %s325_s1 = inlined_call_operand.hbm [shape: f32[32,32], index: 1, kind: input, shape index: {}]   ;;  %s326_s2 = inlined_call_operand.vmem [shape: f32[1,32], index: 2, kind: input, shape index: {}]   ;;  %s327_s3 = inlined_call_operand.hbm [shape: f32[32,32], index: 3, kind: input, shape index: {}]   ;;  %s328_s4 = inlined_call_operand.vmem [shape: f32[1,32], index: 4, kind: input, shape index: {}]   ;;  %s329_s5 = inlined_call_operand.hbm [shape: f32[8,32], index: 5, kind: output, shape index: {}]  }
   0x1   :  { %11 = vsyncpa [#allocation6], 0  ;;  %s28_s20 = sshll.u32 %s325_s1, 4  ;;  %s29_s20 = int_to_ptr.hbm [resolvable:$true] %s28_s20 }
   0x2   :  { %12 = vsyncpa [#allocation4], 0  ;;  %s267_s21 = smov [#allocation5]   ;;  %s18_s25 = sshll.u32 %s324_s0, 4  ;;  %s19_s25 = int_to_ptr.hbm [resolvable:$true] %s18_s25 }
   0x3   :  { %s30_s22 = sshll.u32 %s267_s21, 4  ;;  %s268_s26 = smov 128   ;;  %s31_s22 = int_to_ptr.vmem [resolvable:$true] %s30_s22 }
   0x4   :  { %s269_s27 = smov 8   ;;  %s270_s28 = smov [#allocation2]  }
   0x5   :  { %36 = dma.hbm_to_vmem [thread:$0]  %s29_s20, 512, %s31_s22, [#allocation6], %s268_s26, %s268_s26, %s269_s27  }
   0x6   :  { %s20_s29 = sshll.u32 %s270_s28, 4  ;;  %s43_s7 = sshll.u32 %s327_s3, 4  ;;  %s21_s29 = int_to_ptr.vmem [resolvable:$true] %s20_s29  ;;  %s44_s7 = int_to_ptr.hbm [resolvable:$true] %s43_s7 }
   0x7   :  { %23 = dma.hbm_to_vmem [thread:$0]  %s19_s25, 128, %s21_s29, [#allocation3]  }
   0x8   :  { %s271_s1 = smov [#allocation7]  }
   0x9   :  { %s45_s8 = sshll.u32 %s271_s1, 4  ;;  %s46_s8 = int_to_ptr.vmem [resolvable:$true] %s45_s8 }
   0xa   :  { %51 = dma.hbm_to_vmem [thread:$0]  %s44_s7, 512, %s46_s8, [#allocation6], %s268_s26, %s268_s26, %s269_s27  }
   0xb   :  { %261 = dma.done.wait [#allocation3], 128  }
   0xc   :  { %262 = vsyncadd [#allocation3], 4294967168 }
   0xd   :  { %263 = dma.done.wait [#allocation6], 1024  }
   0xe   :  { %264 = vsyncadd [#allocation6], 4294966272  ;;  %v70_v0 = vld [vmem:[#allocation5 + $0x18] sm:$0xff]  ;;  %v69_v1 = vld [vmem:[#allocation5 + $0x10] sm:$0xff]  ;;  %vm75_vm0 = vcmask 261120   ;;  %s272_s11 = smov [#allocation8]  }
   0xf   :  { %91 = vmatpush.msra.mxu0 %v70_v0  ;;  %v68_v2 = vld [vmem:[#allocation5 + $0x8] sm:$0xff]  ;;  %v67_v3 = vld [vmem:[#allocation5] sm:$0xff]  ;;  %v66_v4 = vld [vmem:[#allocation2] sm:$0xff]  ;;  %s138_s12 = sshll.u32 %s272_s11, 4  ;;  %s140_s15 = sshll.u32 %s329_s5, 4  ;;  %s139_s12 = int_to_ptr.vmem [resolvable:$true] %s138_s12  ;;  %s141_s15 = int_to_ptr.hbm [resolvable:$true] %s140_s15 }
  0x10   :  { %v103_v5 = vld [vmem:[#allocation7 + $0x18] sm:$0xff]  ;;  %v102_v6 = vld [vmem:[#allocation7 + $0x10] sm:$0xff]  ;;  %v101_v7 = vld [vmem:[#allocation7 + $0x8] sm:$0xff] }
  0x11   :  { %92 = vmatpush.msra.mxu0 %v69_v1  ;;  %123 = vmatpush.msra.mxu1 %v103_v5  ;;  %v100_v8 = vld [vmem:[#allocation7] sm:$0xff]  ;;  %v159_v9 = vld [vmem:[%s326_s2] ss:$0 sm:$0xff] }
  0x12   :  { %v160_v13 = vld [vmem:[%s328_s4] ss:$0 sm:$0xff] }
  0x13   :  { %93 = vmatpush.msra.mxu0 %v68_v2  ;;  %124 = vmatpush.msra.mxu1 %v102_v6 }
  0x15   :  { %94 = vmatpush.msra.mxu0 %v67_v3  ;;  %125 = vmatpush.msra.mxu1 %v101_v7 }
  0x16   :  { %151 = vmatmul.msk.f32.vlgmr.msra.gmra.mxu0 %vm75_vm0, %v66_v4 }
  0x17   :  { %126 = vmatpush.msra.mxu1 %v100_v8 }
  0x93   :  { %v96_v10 = vpop.f32.mrf.mxu0 }
  0x94   :  { %v97_v11 = vadd.f32 %v159_v9, %v96_v10 }
  0x96   :  { %161 = vtanh.f32 %v97_v11 }
  0x9c   :  { %v162_v12 = vpop.eup %161 }
  0x9d   :  { %152 = vmatmul.msk.f32.vlgmr.msra.gmra.mxu1 %vm75_vm0, %v162_v12 }
 0x11a   :  { %v128_v14 = vpop.f32.mrf.mxu1 }
 0x11b   :  { %v129_v15 = vadd.f32 %v160_v13, %v128_v14 }
 0x11d   :  { %163 = vtanh.f32 %v129_v15 }
 0x123   :  { %v164_v16 = vpop.eup %163 }
 0x124   :  { %132 = vst.msk [vmem:[#allocation8] sm:$0xff] %vm75_vm0, %v164_v16 }
 0x125   :  { %143 = dma.vmem_to_hbm [thread:$0]  %s139_s12, 128, %s141_s15, [#allocation4]  }
 0x126   :  { %265 = dma.done.wait [#allocation4], 128  }
 0x127   :  { %266 = vsyncadd [#allocation4], 4294967168 }
 0x128   :  { %148 = vsyncpa [#allocation3], 1 }
 0x129   :  { %149 = vsyncpa [#allocation6], 1 }
 0x12a   :  { %150 = vsyncpa [#allocation4], 1 }

</bundles_post_ra>
